<compile_context>
chip_gen: v7x
topology: tpu7x:2x2x1
jax: 0.10.0
libtpu: 0.0.40
codegen_flags: <defaults>
</compile_context>

<pallas_src>
import functools

import jax
import jax.numpy as jnp
from jax.experimental import pallas as pl
from jax.experimental.pallas import tpu as pltpu


def _mlp_kernel(x_ref, w1_ref, b1_ref, w2_ref, b2_ref, w3_ref, b3_ref, o_ref):
    """Fused 3-layer MLP; normalization already folded into the weights."""
    x = x_ref[...]                                                       # (tb, Din) f32
    h = jnp.dot(x, w1_ref[...], preferred_element_type=jnp.float32) + b1_ref[...]
    h = jnp.maximum(h, 0.0)                                              # ReLU (VPU)
    h = jnp.dot(h, w2_ref[...], preferred_element_type=jnp.float32) + b2_ref[...]
    h = jnp.maximum(h, 0.0)
    o_ref[...] = jnp.dot(h, w3_ref[...], preferred_element_type=jnp.float32) + b3_ref[...]


def _cdiv(a, b):
    return -(-a // b)


def _round_up(x, m):
    return _cdiv(x, m) * m


def fold_normalization(params):
    """One-time parameter transform.

    Folds (x - in_shift) / in_scale into W1/b1 and y * out_scale + out_shift into
    W3/b3.  Note: b1f = b1 - (in_shift/in_scale) @ w1 reorders floating-point ops;
    if in_shift/in_scale were huge relative to b1 this could cost a few ulps of
    cancellation -- negligible at the 1e-4 tolerance used here.
    Cache the result of this function across predict() calls in real use.
    """
    in_shift, in_scale = params["in_shift"], params["in_scale"]
    out_shift, out_scale = params["out_shift"], params["out_scale"]
    w1, b1 = params["w1"], params["b1"]
    w2, b2 = params["w2"], params["b2"]
    w3, b3 = params["w3"], params["b3"]

    inv_scale = 1.0 / in_scale                          # (1, Din); scale >= 1 by construction
    w1f = w1 * inv_scale.reshape(-1, 1)                 # scale rows of W1
    b1f = b1 - (in_shift * inv_scale) @ w1              # (1, Hid)

    w3f = w3 * out_scale                                # (Hid, Dout) * (1, Dout)
    b3f = b3 * out_scale + out_shift

    return dict(w1=w1f, b1=b1f, w2=w2, b2=b2, w3=w3f, b3=b3f)


def _choose_tile_b(B: int, tile_b: int) -> int:
    """Pick a batch tile: multiple of 8 (or == B when B < 8), capped at tile_b,
    and split so the 'parallel' grid keeps >= 2 steps when the batch allows it
    (lets dimension_semantics shard across the 2 TensorCores on v7x)."""
    if B < 8:
        return B                                   # block dim == full array dim (legal)
    tb = min(tile_b, (B // 8) * 8)                 # largest multiple of 8 <= B, capped
    if _cdiv(B, tb) < 2 and B >= 16:               # grid collapsed to one step: halve
        tb = max(8, _round_up(_cdiv(B, 2), 8))
    return tb


@functools.partial(jax.jit, static_argnames=("tb",))
def _forward_folded(x, w1, b1, w2, b2, w3, b3, *, tb):
    B, din = x.shape
    dout = w3.shape[1]

    # Weights/biases stay VMEM-resident across the whole batch grid.
    resident = lambda a: pl.BlockSpec(a.shape, lambda i: (0, 0))

    return pl.pallas_call(
        _mlp_kernel,
        out_shape=jax.ShapeDtypeStruct((B, dout), jnp.float32),
        grid=(_cdiv(B, tb),),                      # partial last block handled by Pallas
        in_specs=[
            pl.BlockSpec((tb, din), lambda i: (i, 0)),       # activation tile
            resident(w1), resident(b1),
            resident(w2), resident(b2),
            resident(w3), resident(b3),
        ],
        out_specs=pl.BlockSpec((tb, dout), lambda i: (i, 0)),  # unamplified writeback
        compiler_params=pltpu.CompilerParams(
            dimension_semantics=("parallel",)),
    )(x, w1, b1, w2, b2, w3, b3)


def _forward_small(x, f):
    """Latency path for the single-query _predict case (B tiny): plain jnp."""
    h = jnp.maximum(x @ f["w1"] + f["b1"], 0.0)
    h = jnp.maximum(h @ f["w2"] + f["b2"], 0.0)
    return h @ f["w3"] + f["b3"]


def pytorch_regressor_forward(x, params, *, tile_b=4096, min_pallas_batch=16):
    """x: (B, Din) float32 — stack many _predict queries for best throughput.

    params: raw (unfolded) parameter dict.  Returns (B, Dout) float32.
    In real use, cache fold_normalization(params) across calls.
    """
    f = fold_normalization(params)
    B = x.shape[0]
    if B < min_pallas_batch:
        return _forward_small(x, f)
    tb = _choose_tile_b(B, tile_b)
    return _forward_folded(x, f["w1"], f["b1"], f["w2"], f["b2"], f["w3"], f["b3"],
                           tb=tb)


def _init_params(key, din, hidden, dout):
    """Deterministic synthetic parameters (shapes as nn.Linear would create them)."""
    ks = jax.random.split(key, 6)

    def linear(kw, kb, fan_in, fan_out):
        # PyTorch nn.Linear default init: U(-1/sqrt(fan_in), 1/sqrt(fan_in))
        bound = 1.0 / jnp.sqrt(jnp.float32(fan_in))
        w = jax.random.uniform(kw, (fan_in, fan_out), jnp.float32, -bound, bound)
        b = jax.random.uniform(kb, (1, fan_out), jnp.float32, -bound, bound)
        return w, b

    w1, b1 = linear(ks[0], ks[1], din, hidden)
    w2, b2 = linear(ks[2], ks[3], hidden, hidden)
    w3, b3 = linear(ks[4], ks[5], hidden, dout)

    # Normalization constants as produced by _normalize_data (shift=min, scale>=1).
    in_shift = jnp.zeros((1, din), jnp.float32) + 0.1
    in_scale = jnp.ones((1, din), jnp.float32) * 2.0
    out_shift = jnp.zeros((1, dout), jnp.float32) - 0.5
    out_scale = jnp.ones((1, dout), jnp.float32) * 3.0

    return dict(in_shift=in_shift, in_scale=in_scale,
                w1=w1, b1=b1, w2=w2, b2=b2, w3=w3, b3=b3,
                out_shift=out_shift, out_scale=out_scale)


def _reference(x, p):
    """Unfused JAX reference matching the PyTorch predict() semantics."""
    xn = (x - p["in_shift"]) / p["in_scale"]
    h = jnp.maximum(xn @ p["w1"] + p["b1"], 0.0)
    h = jnp.maximum(h @ p["w2"] + p["b2"], 0.0)
    y = h @ p["w3"] + p["b3"]
    return y * p["out_scale"] + p["out_shift"]


if __name__ == "__main__":
    key = jax.random.PRNGKey(0)
    k_x1, k_x2, k_x3, k_p = jax.random.split(key, 4)

    DIN, HID, DOUT = 32, 32, 8
    params = _init_params(k_p, DIN, HID, DOUT)

    # Case 1: single-query _predict path (B=2) — takes the jnp latency bypass.
    x_small = jax.random.normal(k_x1, (2, DIN), jnp.float32)
    y_small = jax.block_until_ready(pytorch_regressor_forward(x_small, params))
    assert y_small.shape == (2, DOUT)
    assert jnp.allclose(y_small, _reference(x_small, params), atol=1e-4, rtol=1e-4), \
        "small-batch (bypass) mismatch vs JAX reference"

    # Case 1b: same tiny batch forced through Pallas (block == full batch dim).
    y_small_pk = jax.block_until_ready(
        pytorch_regressor_forward(x_small, params, min_pallas_batch=0))
    assert jnp.allclose(y_small_pk, _reference(x_small, params), atol=1e-4, rtol=1e-4), \
        "small-batch (pallas) mismatch vs JAX reference"

    # Case 2: batched queries (B=200) — tb=104, grid=(2,) (>=2 steps for v7x 2-TC),
    # partial last block handled without any wrapper-side padding or slicing.
    x_big = jax.random.normal(k_x2, (200, DIN), jnp.float32)
    y_big = jax.block_until_ready(pytorch_regressor_forward(x_big, params))
    assert y_big.shape == (200, DOUT)
    assert jnp.allclose(y_big, _reference(x_big, params), atol=1e-4, rtol=1e-4), \
        "batched mismatch vs JAX reference"

    # Case 3: large batch (B=5000) — exercises the big default tile (tb=4096, grid=2)
    # with a partial last block and VMEM-resident weights.
    x_huge = jax.random.normal(k_x3, (5000, DIN), jnp.float32)
    y_huge = jax.block_until_ready(pytorch_regressor_forward(x_huge, params))
    assert y_huge.shape == (5000, DOUT)
    assert jnp.allclose(y_huge, _reference(x_huge, params), atol=1e-4, rtol=1e-4), \
        "large-batch mismatch vs JAX reference"

    print("KERNEL_OK")
</pallas_src>

<mosaic_0001>
module attributes {stable_mosaic.version = 11 : i64} {
  func.func @_mlp_kernel(%arg0: i32, %arg1: memref<2x32xf32, #tpu.memory_space<vmem>>, %arg2: memref<32x32xf32, #tpu.memory_space<vmem>>, %arg3: memref<1x32xf32, #tpu.memory_space<vmem>>, %arg4: memref<32x32xf32, #tpu.memory_space<vmem>>, %arg5: memref<1x32xf32, #tpu.memory_space<vmem>>, %arg6: memref<32x8xf32, #tpu.memory_space<vmem>>, %arg7: memref<1x8xf32, #tpu.memory_space<vmem>>, %arg8: memref<2x8xf32, #tpu.memory_space<vmem>>) attributes {dimension_semantics = [#tpu.dimension_semantics<parallel>], iteration_bounds = array<i64: 1>, scalar_prefetch = 0 : i64, scratch_operands = 0 : i64, tpu.core_type = #tpu.core_type<tc>, window_params = [{transform_indices = @transform_0, window_bounds = array<i64: 2, 32>}, {pipeline_mode = #tpu.pipeline_mode<synchronous>, transform_indices = @transform_1, window_bounds = array<i64: 32, 32>}, {pipeline_mode = #tpu.pipeline_mode<synchronous>, transform_indices = @transform_2, window_bounds = array<i64: 1, 32>}, {pipeline_mode = #tpu.pipeline_mode<synchronous>, transform_indices = @transform_3, window_bounds = array<i64: 32, 32>}, {pipeline_mode = #tpu.pipeline_mode<synchronous>, transform_indices = @transform_4, window_bounds = array<i64: 1, 32>}, {pipeline_mode = #tpu.pipeline_mode<synchronous>, transform_indices = @transform_5, window_bounds = array<i64: 32, 8>}, {pipeline_mode = #tpu.pipeline_mode<synchronous>, transform_indices = @transform_6, window_bounds = array<i64: 1, 8>}, {transform_indices = @transform_7, window_bounds = array<i64: 2, 8>}]} {
    %c0 = arith.constant 0 : index
    %c0_0 = arith.constant 0 : index
    %0 = vector.load %arg1[%c0, %c0_0] : memref<2x32xf32, #tpu.memory_space<vmem>>, vector<2x32xf32>
    %c0_1 = arith.constant 0 : index
    %c0_2 = arith.constant 0 : index
    %1 = vector.load %arg2[%c0_1, %c0_2] : memref<32x32xf32, #tpu.memory_space<vmem>>, vector<32x32xf32>
    %cst = arith.constant dense<0.000000e+00> : vector<2x32xf32>
    %2 = tpu.matmul %0, %1, %cst {dimension_numbers = #tpu.dot_dimension_numbers<[1], [0], [0], [1], [0, 0, 1, 1], [], []>} : vector<2x32xf32>, vector<32x32xf32>, vector<2x32xf32> -> vector<2x32xf32>
    %c0_3 = arith.constant 0 : index
    %c0_4 = arith.constant 0 : index
    %3 = vector.load %arg3[%c0_3, %c0_4] : memref<1x32xf32, #tpu.memory_space<vmem>>, vector<1x32xf32>
    %4 = vector.broadcast %3 : vector<1x32xf32> to vector<2x32xf32>
    %5 = arith.addf %2, %4 : vector<2x32xf32>
    %cst_5 = arith.constant 0.000000e+00 : f32
    %6 = vector.broadcast %cst_5 : f32 to vector<2x32xf32>
    %7 = arith.maximumf %5, %6 : vector<2x32xf32>
    %c0_6 = arith.constant 0 : index
    %c0_7 = arith.constant 0 : index
    %8 = vector.load %arg4[%c0_6, %c0_7] : memref<32x32xf32, #tpu.memory_space<vmem>>, vector<32x32xf32>
    %cst_8 = arith.constant dense<0.000000e+00> : vector<2x32xf32>
    %9 = tpu.matmul %7, %8, %cst_8 {dimension_numbers = #tpu.dot_dimension_numbers<[1], [0], [0], [1], [0, 0, 1, 1], [], []>} : vector<2x32xf32>, vector<32x32xf32>, vector<2x32xf32> -> vector<2x32xf32>
    %c0_9 = arith.constant 0 : index
    %c0_10 = arith.constant 0 : index
    %10 = vector.load %arg5[%c0_9, %c0_10] : memref<1x32xf32, #tpu.memory_space<vmem>>, vector<1x32xf32>
    %11 = vector.broadcast %10 : vector<1x32xf32> to vector<2x32xf32>
    %12 = arith.addf %9, %11 : vector<2x32xf32>
    %cst_11 = arith.constant 0.000000e+00 : f32
    %13 = vector.broadcast %cst_11 : f32 to vector<2x32xf32>
    %14 = arith.maximumf %12, %13 : vector<2x32xf32>
    %c0_12 = arith.constant 0 : index
    %c0_13 = arith.constant 0 : index
    %15 = vector.load %arg6[%c0_12, %c0_13] : memref<32x8xf32, #tpu.memory_space<vmem>>, vector<32x8xf32>
    %cst_14 = arith.constant dense<0.000000e+00> : vector<2x8xf32>
    %16 = tpu.matmul %14, %15, %cst_14 {dimension_numbers = #tpu.dot_dimension_numbers<[1], [0], [0], [1], [0, 0, 1, 1], [], []>} : vector<2x32xf32>, vector<32x8xf32>, vector<2x8xf32> -> vector<2x8xf32>
    %c0_15 = arith.constant 0 : index
    %c0_16 = arith.constant 0 : index
    %17 = vector.load %arg7[%c0_15, %c0_16] : memref<1x8xf32, #tpu.memory_space<vmem>>, vector<1x8xf32>
    %18 = vector.broadcast %17 : vector<1x8xf32> to vector<2x8xf32>
    %19 = arith.addf %16, %18 : vector<2x8xf32>
    %c0_17 = arith.constant 0 : index
    %c0_18 = arith.constant 0 : index
    %20 = vector.load %arg8[%c0_17, %c0_18] : memref<2x8xf32, #tpu.memory_space<vmem>>, vector<2x8xf32>
    tpu.vector_store %arg8[%c0_17, %c0_18], %19 {strides = array<i32>} : memref<2x8xf32, #tpu.memory_space<vmem>>, vector<2x8xf32>,
    return
  }
  func.func @transform_0(%arg0: i32) -> (i32, i32) {
    %c0_i32 = arith.constant 0 : i32
    %c0_i32_0 = arith.constant 0 : i32
    return %arg0, %c0_i32 : i32, i32
  }
  func.func @transform_1(%arg0: i32) -> (i32, i32) {
    %c0_i32 = arith.constant 0 : i32
    %c0_i32_0 = arith.constant 0 : i32
    %c0_i32_1 = arith.constant 0 : i32
    return %c0_i32, %c0_i32_0 : i32, i32
  }
  func.func @transform_2(%arg0: i32) -> (i32, i32) {
    %c0_i32 = arith.constant 0 : i32
    %c0_i32_0 = arith.constant 0 : i32
    %c0_i32_1 = arith.constant 0 : i32
    return %c0_i32, %c0_i32_0 : i32, i32
  }
  func.func @transform_3(%arg0: i32) -> (i32, i32) {
    %c0_i32 = arith.constant 0 : i32
    %c0_i32_0 = arith.constant 0 : i32
    %c0_i32_1 = arith.constant 0 : i32
    return %c0_i32, %c0_i32_0 : i32, i32
  }
  func.func @transform_4(%arg0: i32) -> (i32, i32) {
    %c0_i32 = arith.constant 0 : i32
    %c0_i32_0 = arith.constant 0 : i32
    %c0_i32_1 = arith.constant 0 : i32
    return %c0_i32, %c0_i32_0 : i32, i32
  }
  func.func @transform_5(%arg0: i32) -> (i32, i32) {
    %c0_i32 = arith.constant 0 : i32
    %c0_i32_0 = arith.constant 0 : i32
    %c0_i32_1 = arith.constant 0 : i32
    return %c0_i32, %c0_i32_0 : i32, i32
  }
  func.func @transform_6(%arg0: i32) -> (i32, i32) {
    %c0_i32 = arith.constant 0 : i32
    %c0_i32_0 = arith.constant 0 : i32
    %c0_i32_1 = arith.constant 0 : i32
    return %c0_i32, %c0_i32_0 : i32, i32
  }
  func.func @transform_7(%arg0: i32) -> (i32, i32) {
    %c0_i32 = arith.constant 0 : i32
    %c0_i32_0 = arith.constant 0 : i32
    return %arg0, %c0_i32 : i32, i32
  }
}

</mosaic_0001>

<bundles_post_ra>
// kernel: _forward_folded.1
= control target key start
LH: loop header
LB: loop body
LE: loop exit
PB: predicated region body
PF: predicated region fallthrough
CT: control target
= control target key end

     0   :  { %12 = vsyncpa [#allocation3], 0  ;;  %s554_s0 = inlined_call_operand.vmem [shape: f32[2,32], index: 0, kind: input, shape index: {}]   ;;  %s555_s1 = inlined_call_operand.vmem [shape: f32[32,32], index: 1, kind: input, shape index: {}]   ;;  %s556_s2 = inlined_call_operand.vmem [shape: f32[1,32], index: 2, kind: input, shape index: {}]   ;;  %s557_s3 = inlined_call_operand.hbm [shape: f32[32,32], index: 3, kind: input, shape index: {}]   ;;  %s558_s4 = inlined_call_operand.vmem [shape: f32[1,32], index: 4, kind: input, shape index: {}]   ;;  %s559_s5 = inlined_call_operand.vmem [shape: f32[32,8], index: 5, kind: input, shape index: {}]   ;;  %s560_s6 = inlined_call_operand.vmem [shape: f32[1,8], index: 6, kind: input, shape index: {}]   ;;  %s561_s7 = inlined_call_operand.hbm [shape: f32[2,8], index: 7, kind: output, shape index: {}]  }
   0x1   :  { %13 = vsyncpa [#allocation4], 0  ;;  %s441_s24 = smov [#allocation2]   ;;  %s393_s28 = scalar_lea.hbm %s557_s3, 512 }
   0x2   :  { %s25_s25 = sshll.u32 %s441_s24, 4  ;;  %p394_p0 = scmp.ne.s32.totalorder %s557_s3, %s393_s28  ;;  %s26_s25 = int_to_ptr.vmem [resolvable:$true] %s25_s25 }
   0x3   :  { %p397_p1 = scmp.lt.u32.totalorder %s393_s28, %s557_s3 }
   0x5   :  { %p399_p2 = pnand %p397_p1, %p394_p0 }
   0x7   :  { %402 = shalt.err (!%p399_p2)
}
   0x8   :  { %s403_s10 = scalar_lea.vmem %s26_s25, 512  ;;  %p408_p4 = scmp.lt.s32.totalorder %s26_s25, %s26_s25 }
   0x9   :  { %p404_p3 = scmp.ne.s32.totalorder %s26_s25, %s403_s10  ;;  %p409_p5 = scmp.lt.s32.totalorder %s403_s10, %s403_s10 }
   0xb   :  { %p410_p6 = por %p409_p5, %p408_p4 }
   0xd   :  { %p411_p7 = pnand %p410_p6, %p404_p3 }
   0xf   :  { %414 = shalt.err (!%p411_p7)
}
  0x10   :  { %s442_s11 = smov 128   ;;  %s443_s12 = smov 8  }
  0x11   :  { %31 = dma.hbm_to_vmem [thread:$0]  %s557_s3, 512, %s26_s25, [#allocation3], %s442_s11, %s442_s11, %s443_s12  }
  0x12   :  { %437 = dma.done.wait [#allocation3], 512  }
  0x13   :  { %438 = vsyncadd [#allocation3], 4294966784  ;;  %v444_v0 = vmov 0.0|0.0   ;;  %vm445_vm0 = vmmov 0   ;;  %v446_v1 = vmov 0.0   ;;  %v42_v2 = vld [vmem:[%s555_s1] sm:$0xff] }
  0x14   :  { %368 = vmatprep.subr.bf16.mxu0 %v444_v0  ;;  %343 = vmatprep.mubr.msk.f32.mxu0 %vm445_vm0, %v446_v1  ;;  %v43_v3 = vld [vmem:[%s555_s1 + $0x8] sm:$0xff]  ;;  %v44_v4 = vld [vmem:[%s555_s1 + $0x10] sm:$0xff]  ;;  %v45_v6 = vld [vmem:[%s555_s1 + $0x18] sm:$0xff]  ;;  %vm53_vm1 = vcmask 261120   ;;  %s447_s12 = smov [#allocation5]   ;;  %vm297_vm2 = vcmask 58368  }
  0x15   :  { %374 = vmatprep.subr.bf16.mxu1 %v444_v0  ;;  %354 = vmatprep.mubr.msk.f32.mxu1 %vm445_vm0, %v446_v1  ;;  %v369_v5 = vpack.c.bf16 %v43_v3, %v42_v2  ;;  %v128_v7 = vld [vmem:[#allocation2] sm:$0xff]  ;;  %v129_v8 = vld [vmem:[#allocation2 + $0x8] sm:$0xff]  ;;  %v372_v9 = vpack.c.bf16 %v45_v6, %v44_v4  ;;  %v130_v12 = vld [vmem:[#allocation2 + $0x10] sm:$0xff]  ;;  %s305_s13 = sshll.u32 %s447_s12, 4  ;;  %s306_s13 = int_to_ptr.vmem [resolvable:$true] %s305_s13 }
  0x16   :  { %v375_v10 = vpack.c.bf16 %v129_v8, %v128_v7  ;;  %v41_v11 = vld [vmem:[%s554_s0] sm:$0x3]  ;;  %v131_v13 = vld [vmem:[#allocation2 + $0x18] sm:$0xff]  ;;  %v214_v16 = vld [vmem:[%s559_s5 + $0x8] sm:$0xff]  ;;  %p420_p9 = scmp.lt.s32.totalorder %s306_s13, %s306_s13 }
  0x17   :  { %370 = vmatpush3.bf16.msra.mxu0 %v369_v5  ;;  %v378_v14 = vpack.c.bf16 %v131_v13, %v130_v12  ;;  %v213_v15 = vld [vmem:[%s559_s5] sm:$0xff]  ;;  %v215_v23 = vld [vmem:[%s559_s5 + $0x10] sm:$0xff]  ;;  %v216_v24 = vld [vmem:[%s559_s5 + $0x18] sm:$0xff]  ;;  %s415_s5 = scalar_lea.vmem %s306_s13, 32 }
  0x18   :  { %371 = vmatprep.subr.bf16.mxu0 %v444_v0  ;;  %376 = vmatpush3.bf16.msra.mxu1 %v375_v10  ;;  %v381_v17 = vpack.c.bf16 %v214_v16, %v213_v15  ;;  %v314_v18 = vld [vmem:[%s556_s2] ss:$0 sm:$0xff]  ;;  %v384_v25 = vpack.c.bf16 %v216_v24, %v215_v23  ;;  %p416_p8 = scmp.ne.s32.totalorder %s306_s13, %s415_s5  ;;  %p421_p10 = scmp.lt.s32.totalorder %s415_s5, %s415_s5 }
  0x19   :  { %377 = vmatprep.subr.bf16.mxu1 %v444_v0  ;;  %v316_v26 = vld [vmem:[%s558_s4] ss:$0 sm:$0xff] }
  0x1a   :  { %v318_v31 = vld [vmem:[%s560_s6] ss:$0 sm:$0xff]  ;;  %p422_p11 = por %p421_p10, %p420_p9 }
  0x1b   :  { %373 = vmatpush3.bf16.msra.mxu0 %v372_v9 }
  0x1c   :  { %380 = vmatprep.subr.bf16.mxu0 %v444_v0  ;;  %379 = vmatpush3.bf16.msra.mxu1 %v378_v14  ;;  %p423_p12 = pnand %p422_p11, %p416_p8 }
  0x1e   :  { %344 = vmatmul.mubr.msk.f32.vlgmr.msra.gmra.mrb[0].mxu0 %vm53_vm1, %v41_v11 }
  0x1f   :  { %365 = vmatprep.mubr.msk.f32.mxu0 %vm445_vm0, %v446_v1  ;;  %382 = vmatpush3.bf16.msra.mxu0 %v381_v17 }
  0x20   :  { %383 = vmatprep.subr.bf16.mxu0 %v444_v0 }
  0x23   :  { %385 = vmatpush3.bf16.msra.mxu0 %v384_v25 }
  0xf1   :  { %v123_v19 = vpop.f32.mrb[0].mxu0 }
  0xf2   :  { %v124_v20 = vadd.f32 %v314_v18, %v123_v19  ;;  %v345_v21 = vpop.f32.mrb[1].mxu0 }
  0xf4   :  { %v127_v22 = vmax.f32 %v124_v20, 0.0 }
  0xf6   :  { %355 = vmatmul.mubr.msk.f32.vlgmr.msra.gmra.mrb[0].mxu1 %vm53_vm1, %v127_v22 }
 0x1c9   :  { %v208_v27 = vpop.f32.mrb[0].mxu1 }
 0x1ca   :  { %v209_v28 = vadd.f32 %v316_v26, %v208_v27  ;;  %v356_v29 = vpop.f32.mrb[1].mxu1 }
 0x1cc   :  { %v212_v30 = vmax.f32 %v209_v28, 0.0 }
 0x1ce   :  { %366 = vmatmul.mubr.msk.f32.vlgmr.msra.gmra.mrb[2].mxu0 %vm53_vm1, %v212_v30 }
 0x2a1   :  { %v293_v32 = vpop.f32.mrb[2].mxu0 }
 0x2a2   :  { %v294_v33 = vadd.f32 %v318_v31, %v293_v32  ;;  %v367_v34 = vpop.f32.mrb[3].mxu0 }
 0x2a4   :  { %298 = vst.msk [vmem:[#allocation5] sm:$0x3] %vm297_vm2, %v294_v33 }
 0x2a5   :  { %426 = shalt.err (!%p423_p12)
}
 0x2a6   :  { %s427_s15 = scalar_lea.hbm %s561_s7, 32 }
 0x2a7   :  { %p428_p13 = scmp.ne.s32.totalorder %s561_s7, %s427_s15  ;;  %p431_p0 = scmp.lt.u32.totalorder %s427_s15, %s561_s7 }
 0x2a9   :  { %p433_p1 = pnand %p431_p0, %p428_p13 }
 0x2ab   :  { %436 = shalt.err (!%p433_p1)
}
 0x2ac   :  { %308 = dma.vmem_to_hbm [thread:$0]  %s306_s13, 32, %s561_s7, [#allocation4]  }
 0x2ad   :  { %439 = dma.done.wait [#allocation4], 32  }
 0x2ae   :  { %440 = vsyncadd [#allocation4], 4294967264 }
 0x2af   :  { %312 = vsyncpa [#allocation3], 1 }
 0x2b0   :  { %313 = vsyncpa [#allocation4], 1 }

</bundles_post_ra>
